<compile_context>
chip_gen: v7x
topology: tpu7x:2x2x1
jax: 0.10.0
libtpu: 0.0.40
codegen_flags: <defaults>
</compile_context>

<pallas_src>
import functools

import jax
import jax.numpy as jnp
from jax.experimental import pallas as pl
from jax.experimental.pallas import tpu as pltpu

_LANE = 128          # lane width; every feature dim is padded to this
_W_ROWS = 3 * _LANE  # packed weights: three stacked (128, 128) blocks
_B_ROWS = 8          # packed biases: rows 0..2 used, rest zero


def _net_tl_kernel(x_ref, w_ref, b_ref, o_ref):
    # x_ref: (TB, 128) f32   w_ref: (384, 128) bf16   b_ref: (8, 128) f32
    x = x_ref[...].astype(jnp.bfloat16)

    w1 = w_ref[0:_LANE, :]
    w2 = w_ref[_LANE:2 * _LANE, :]
    w3 = w_ref[2 * _LANE:3 * _LANE, :]

    b1 = b_ref[0:1, :]
    b2 = b_ref[1:2, :]
    b3 = b_ref[2:3, :]

    # hidden1 + leaky_relu(0.1)   (bias add / activation in f32)
    y1 = jnp.dot(x, w1, preferred_element_type=jnp.float32) + b1
    y1 = jnp.maximum(y1, 0.1 * y1)

    # hidden2 + leaky_relu(0.1)
    y2 = jnp.dot(y1.astype(jnp.bfloat16), w2, preferred_element_type=jnp.float32) + b2
    y2 = jnp.maximum(y2, 0.1 * y2)

    # output + relu6
    y3 = jnp.dot(y2.astype(jnp.bfloat16), w3, preferred_element_type=jnp.float32) + b3
    o_ref[...] = jnp.clip(y3, 0.0, 6.0)


@functools.partial(jax.jit, static_argnames=("output_size",))
def _run_batched(xs, wpack, bpack, *, output_size):
    """xs: (B, input_size) -> (B, output_size). Pads to lane-dense blocks."""
    B, in_size = xs.shape
    tb = 128 if B >= 128 else 8                 # batch tile (MXU rows / sublanes)
    bp = ((B + tb - 1) // tb) * tb              # padded batch

    x_pad = jnp.zeros((bp, _LANE), jnp.float32)
    x_pad = x_pad.at[:B, :in_size].set(xs.astype(jnp.float32))

    grid = (bp // tb,)
    flops = 2 * bp * (3 * _LANE * _LANE)
    bytes_accessed = (x_pad.size * 4 + wpack.size * 2
                      + bpack.size * 4 + bp * _LANE * 4)

    out = pl.pallas_call(
        _net_tl_kernel,
        out_shape=jax.ShapeDtypeStruct((bp, _LANE), jnp.float32),
        grid=grid,
        in_specs=[
            pl.BlockSpec((tb, _LANE), lambda i: (i, 0)),        # x block
            pl.BlockSpec((_W_ROWS, _LANE), lambda i: (0, 0)),   # packed weights
            pl.BlockSpec((_B_ROWS, _LANE), lambda i: (0, 0)),   # packed biases
        ],
        out_specs=pl.BlockSpec((tb, _LANE), lambda i: (i, 0)),
        compiler_params=pltpu.CompilerParams(
            dimension_semantics=("parallel",),      # shards batch across TCs (v7x)
            vmem_limit_bytes=32 * 1024 * 1024,
        ),
        cost_estimate=pl.CostEstimate(
            flops=flops, transcendentals=0, bytes_accessed=bytes_accessed),
    )(x_pad, wpack, bpack)

    return out[:B, :output_size]


def net_tl_forward(x, packed_params, output_size):
    """Single sample, matches Net_TL.forward: x.view(1,1,-1) -> (1,1,output_size)."""
    wpack, bpack = packed_params
    x_flat = jnp.reshape(x, (1, -1)).astype(jnp.float32)
    out = _run_batched(x_flat, wpack, bpack, output_size=output_size)
    return jnp.reshape(out, (1, 1, output_size))


def net_tl_forward_batched(xs, packed_params, output_size):
    """Throughput path: (B, input_size) -> (B, output_size)."""
    wpack, bpack = packed_params
    return _run_batched(xs, wpack, bpack, output_size=output_size)


def init_params(key, input_size, output_size):
    """nn.Linear-style U(-1/sqrt(fan_in), 1/sqrt(fan_in)) init.

    Weights stored as (in_features, out_features) = transpose of PyTorch.
    """
    hs1 = input_size * 2
    hs2 = output_size * 2
    dims = [(input_size, hs1), (hs1, hs2), (hs2, output_size)]
    params = []
    keys = jax.random.split(key, 2 * len(dims))
    for i, (fan_in, fan_out) in enumerate(dims):
        bound = 1.0 / jnp.sqrt(jnp.float32(fan_in))
        w = jax.random.uniform(keys[2 * i], (fan_in, fan_out),
                               minval=-bound, maxval=bound, dtype=jnp.float32)
        b = jax.random.uniform(keys[2 * i + 1], (1, fan_out),
                               minval=-bound, maxval=bound, dtype=jnp.float32)
        params.extend([w, b])
    return tuple(params)


def pack_params(params):
    """Pack (w1,b1,w2,b2,w3,b3) into one bf16 weight slab + one f32 bias slab."""
    w1, b1, w2, b2, w3, b3 = params
    for w in (w1, w2, w3):
        assert w.shape[0] <= _LANE and w.shape[1] <= _LANE, \
            "pack_params only supports layer widths <= 128 (see TODO)"

    def pad_w(w):
        return jnp.pad(w, ((0, _LANE - w.shape[0]), (0, _LANE - w.shape[1])))

    def pad_b(b):
        return jnp.pad(b, ((0, 0), (0, _LANE - b.shape[1])))

    wpack = jnp.concatenate([pad_w(w1), pad_w(w2), pad_w(w3)],
                            axis=0).astype(jnp.bfloat16)          # (384, 128)
    bpack = jnp.concatenate(
        [pad_b(b1), pad_b(b2), pad_b(b3),
         jnp.zeros((_B_ROWS - 3, _LANE), jnp.float32)], axis=0)   # (8, 128)
    return wpack, bpack


def net_tl_reference(x, params):
    """Pure-JAX f32 reference of the PyTorch forward (for correctness check)."""
    w1, b1, w2, b2, w3, b3 = params
    h = jnp.reshape(x, (1, -1)).astype(jnp.float32)
    y = h @ w1 + b1
    y = jnp.where(y >= 0.0, y, 0.1 * y)
    y = y @ w2 + b2
    y = jnp.where(y >= 0.0, y, 0.1 * y)
    y = y @ w3 + b3
    y = jnp.clip(y, 0.0, 6.0)
    return jnp.reshape(y, (1, 1, -1))


if __name__ == "__main__":
    input_size = 32
    output_size = 8

    key = jax.random.PRNGKey(0)
    k_params, k_x, k_batch = jax.random.split(key, 3)

    params = init_params(k_params, input_size, output_size)
    packed = pack_params(params)

    # --- single-sample forward (exact Net_TL.forward contract) ---
    x = jax.random.normal(k_x, (input_size,), dtype=jnp.float32)
    y = net_tl_forward(x, packed, output_size)
    jax.block_until_ready(y)
    assert y.shape == (1, 1, output_size)
    assert y.dtype == jnp.float32

    y_ref = net_tl_reference(x, params)
    max_err = float(jnp.max(jnp.abs(y - y_ref)))
    assert max_err < 0.1, f"kernel vs f32 reference mismatch: {max_err}"

    # --- batched throughput path (grid over batch, parallel across cores) ---
    xb = jax.random.normal(k_batch, (16, input_size), dtype=jnp.float32)
    yb = net_tl_forward_batched(xb, packed, output_size)
    jax.block_until_ready(yb)
    assert yb.shape == (16, output_size)
    yb_ref = jnp.concatenate(
        [jnp.reshape(net_tl_reference(xb[i], params), (1, output_size))
         for i in range(xb.shape[0])], axis=0)
    assert float(jnp.max(jnp.abs(yb - yb_ref))) < 0.1

    print("KERNEL_OK")
</pallas_src>

<mosaic_0001>
module attributes {stable_mosaic.version = 11 : i64} {
  func.func @_net_tl_kernel(%arg0: i32, %arg1: memref<8x128xf32, #tpu.memory_space<vmem>>, %arg2: memref<384x128xbf16, #tpu.memory_space<vmem>>, %arg3: memref<8x128xf32, #tpu.memory_space<vmem>>, %arg4: memref<8x128xf32, #tpu.memory_space<vmem>>) attributes {dimension_semantics = [#tpu.dimension_semantics<parallel>], iteration_bounds = array<i64: 1>, scalar_prefetch = 0 : i64, scratch_operands = 0 : i64, tpu.core_type = #tpu.core_type<tc>, window_params = [{transform_indices = @transform_0, window_bounds = array<i64: 8, 128>}, {pipeline_mode = #tpu.pipeline_mode<synchronous>, transform_indices = @transform_1, window_bounds = array<i64: 384, 128>}, {pipeline_mode = #tpu.pipeline_mode<synchronous>, transform_indices = @transform_2, window_bounds = array<i64: 8, 128>}, {transform_indices = @transform_3, window_bounds = array<i64: 8, 128>}]} {
    %c0 = arith.constant 0 : index
    %c0_0 = arith.constant 0 : index
    %0 = vector.load %arg1[%c0, %c0_0] : memref<8x128xf32, #tpu.memory_space<vmem>>, vector<8x128xf32>
    %1 = arith.truncf %0 : vector<8x128xf32> to vector<8x128xbf16>
    %c0_1 = arith.constant 0 : index
    %c0_2 = arith.constant 0 : index
    %2 = vector.load %arg2[%c0_1, %c0_2] : memref<384x128xbf16, #tpu.memory_space<vmem>>, vector<128x128xbf16>
    %c128 = arith.constant 128 : index
    %c0_3 = arith.constant 0 : index
    %3 = vector.load %arg2[%c128, %c0_3] : memref<384x128xbf16, #tpu.memory_space<vmem>>, vector<128x128xbf16>
    %c256 = arith.constant 256 : index
    %c0_4 = arith.constant 0 : index
    %4 = vector.load %arg2[%c256, %c0_4] : memref<384x128xbf16, #tpu.memory_space<vmem>>, vector<128x128xbf16>
    %c0_5 = arith.constant 0 : index
    %c0_6 = arith.constant 0 : index
    %5 = vector.load %arg3[%c0_5, %c0_6] : memref<8x128xf32, #tpu.memory_space<vmem>>, vector<1x128xf32>
    %c1 = arith.constant 1 : index
    %c0_7 = arith.constant 0 : index
    %6 = vector.load %arg3[%c1, %c0_7] : memref<8x128xf32, #tpu.memory_space<vmem>>, vector<1x128xf32>
    %c2 = arith.constant 2 : index
    %c0_8 = arith.constant 0 : index
    %7 = vector.load %arg3[%c2, %c0_8] : memref<8x128xf32, #tpu.memory_space<vmem>>, vector<1x128xf32>
    %cst = arith.constant dense<0.000000e+00> : vector<8x128xf32>
    %8 = tpu.matmul %1, %2, %cst {dimension_numbers = #tpu.dot_dimension_numbers<[1], [0], [0], [1], [0, 0, 1, 1], [], []>} : vector<8x128xbf16>, vector<128x128xbf16>, vector<8x128xf32> -> vector<8x128xf32>
    %9 = vector.broadcast %5 : vector<1x128xf32> to vector<8x128xf32>
    %10 = arith.addf %8, %9 : vector<8x128xf32>
    %cst_9 = arith.constant 1.000000e-01 : f32
    %11 = vector.broadcast %cst_9 : f32 to vector<8x128xf32>
    %12 = arith.mulf %11, %10 : vector<8x128xf32>
    %13 = arith.maximumf %10, %12 : vector<8x128xf32>
    %14 = arith.truncf %13 : vector<8x128xf32> to vector<8x128xbf16>
    %cst_10 = arith.constant dense<0.000000e+00> : vector<8x128xf32>
    %15 = tpu.matmul %14, %3, %cst_10 {dimension_numbers = #tpu.dot_dimension_numbers<[1], [0], [0], [1], [0, 0, 1, 1], [], []>} : vector<8x128xbf16>, vector<128x128xbf16>, vector<8x128xf32> -> vector<8x128xf32>
    %16 = vector.broadcast %6 : vector<1x128xf32> to vector<8x128xf32>
    %17 = arith.addf %15, %16 : vector<8x128xf32>
    %cst_11 = arith.constant 1.000000e-01 : f32
    %18 = vector.broadcast %cst_11 : f32 to vector<8x128xf32>
    %19 = arith.mulf %18, %17 : vector<8x128xf32>
    %20 = arith.maximumf %17, %19 : vector<8x128xf32>
    %21 = arith.truncf %20 : vector<8x128xf32> to vector<8x128xbf16>
    %cst_12 = arith.constant dense<0.000000e+00> : vector<8x128xf32>
    %22 = tpu.matmul %21, %4, %cst_12 {dimension_numbers = #tpu.dot_dimension_numbers<[1], [0], [0], [1], [0, 0, 1, 1], [], []>} : vector<8x128xbf16>, vector<128x128xbf16>, vector<8x128xf32> -> vector<8x128xf32>
    %23 = vector.broadcast %7 : vector<1x128xf32> to vector<8x128xf32>
    %24 = arith.addf %22, %23 : vector<8x128xf32>
    %cst_13 = arith.constant 0.000000e+00 : f32
    %cst_14 = arith.constant 6.000000e+00 : f32
    %25 = vector.broadcast %cst_13 : f32 to vector<8x128xf32>
    %26 = arith.maximumf %25, %24 : vector<8x128xf32>
    %27 = vector.broadcast %cst_14 : f32 to vector<8x128xf32>
    %28 = arith.minimumf %27, %26 : vector<8x128xf32>
    %c0_15 = arith.constant 0 : index
    %c0_16 = arith.constant 0 : index
    %29 = vector.load %arg4[%c0_15, %c0_16] : memref<8x128xf32, #tpu.memory_space<vmem>>, vector<8x128xf32>
    tpu.vector_store %arg4[%c0_15, %c0_16], %28 {strides = array<i32>} : memref<8x128xf32, #tpu.memory_space<vmem>>, vector<8x128xf32>,
    return
  }
  func.func @transform_0(%arg0: i32) -> (i32, i32) {
    %c0_i32 = arith.constant 0 : i32
    %c0_i32_0 = arith.constant 0 : i32
    return %arg0, %c0_i32 : i32, i32
  }
  func.func @transform_1(%arg0: i32) -> (i32, i32) {
    %c0_i32 = arith.constant 0 : i32
    %c0_i32_0 = arith.constant 0 : i32
    %c0_i32_1 = arith.constant 0 : i32
    return %c0_i32, %c0_i32_0 : i32, i32
  }
  func.func @transform_2(%arg0: i32) -> (i32, i32) {
    %c0_i32 = arith.constant 0 : i32
    %c0_i32_0 = arith.constant 0 : i32
    %c0_i32_1 = arith.constant 0 : i32
    return %c0_i32, %c0_i32_0 : i32, i32
  }
  func.func @transform_3(%arg0: i32) -> (i32, i32) {
    %c0_i32 = arith.constant 0 : i32
    %c0_i32_0 = arith.constant 0 : i32
    return %arg0, %c0_i32 : i32, i32
  }
}

</mosaic_0001>

<bundles_post_ra>
// kernel: _run_batched.1
= control target key start
LH: loop header
LB: loop body
LE: loop exit
PB: predicated region body
PF: predicated region fallthrough
CT: control target
= control target key end

     0   :  { %8 = vsyncpa [#allocation3], 0  ;;  %s539_s12 = smov [#allocation2]   ;;  %s621_s0 = inlined_call_operand.vmem [shape: f32[8,128], index: 0, kind: input, shape index: {}]   ;;  %s622_s1 = inlined_call_operand.hbm [shape: bf16[384,128], index: 1, kind: input, shape index: {}]   ;;  %s623_s2 = inlined_call_operand.vmem [shape: f32[8,128], index: 2, kind: input, shape index: {}]   ;;  %s624_s3 = inlined_call_operand.vmem [shape: f32[8,128], index: 3, kind: output, shape index: {}]  }
   0x1   :  { %s16_s13 = sshll.u32 %s539_s12, 4  ;;  %s515_s16 = scalar_lea.hbm %s622_s1, 3072  ;;  %s17_s13 = int_to_ptr.vmem [resolvable:$true] %s16_s13 }
   0x2   :  { %p516_p0 = scmp.ne.s32.totalorder %s622_s1, %s515_s16  ;;  %p519_p1 = scmp.lt.u32.totalorder %s515_s16, %s622_s1 }
   0x4   :  { %p521_p2 = pnand %p519_p1, %p516_p0 }
   0x6   :  { %524 = shalt.err (!%p521_p2)
}
   0x7   :  { %s525_s21 = scalar_lea.vmem %s17_s13, 3072  ;;  %p530_p4 = scmp.lt.s32.totalorder %s17_s13, %s17_s13 }
   0x8   :  { %p526_p3 = scmp.ne.s32.totalorder %s17_s13, %s525_s21  ;;  %p531_p5 = scmp.lt.s32.totalorder %s525_s21, %s525_s21 }
   0xa   :  { %p532_p6 = por %p531_p5, %p530_p4 }
   0xc   :  { %p533_p7 = pnand %p532_p6, %p526_p3 }
   0xe   :  { %536 = shalt.err (!%p533_p7)
}
   0xf   :  { %s540_s22 = smov 64   ;;  %s541_s23 = smov 4  }
  0x10   :  { %22 = dma.hbm_to_vmem [thread:$0]  %s622_s1, 3072, %s17_s13, [#allocation3], %s540_s22, %s540_s22, %s541_s23  }
  0x11   :  { %537 = dma.done.wait [#allocation3], 3072  }
  0x12   :  { %538 = vsyncadd [#allocation3], 4294964224  ;;  %v542_v0 = vmov 0.0   ;;  %vm543_vm0 = vmmov 0   ;;  %v491_v1 = vld [vmem:[#allocation2] sm:$0xff]   ;;  %v492_v2 = vld [vmem:[#allocation2 + $0x8] sm:$0xff]  }
  0x13   :  { %426 = vmatprep.subr.bf16.mxu0 %v542_v0  ;;  %442 = vmatprep.mubr.msk.bf16.mxu0 %vm543_vm0, %v542_v0  ;;  %v493_v3 = vld [vmem:[#allocation2 + $0x10] sm:$0xff]   ;;  %v499_v4 = vld [vmem:[#allocation2 + $0x40] sm:$0xff]   ;;  %v494_v5 = vld [vmem:[#allocation2 + $0x18] sm:$0xff]  }
  0x14   :  { %446 = vmatprep.subr.bf16.mxu1 %v542_v0  ;;  %462 = vmatprep.mubr.msk.bf16.mxu1 %vm543_vm0, %v542_v0  ;;  %v500_v6 = vld [vmem:[#allocation2 + $0x48] sm:$0xff]   ;;  %v495_v7 = vld [vmem:[#allocation2 + $0x20] sm:$0xff]   ;;  %v501_v8 = vld [vmem:[#allocation2 + $0x50] sm:$0xff]  }
  0x15   :  { %427 = vmatpush3.bf16.msra.mxu0 %v491_v1  ;;  %447 = vmatpush3.bf16.msra.mxu1 %v499_v4  ;;  %v496_v9 = vld [vmem:[#allocation2 + $0x28] sm:$0xff]   ;;  %v502_v10 = vld [vmem:[#allocation2 + $0x58] sm:$0xff]   ;;  %v497_v11 = vld [vmem:[#allocation2 + $0x30] sm:$0xff]  }
  0x16   :  { %428 = vmatprep.subr.bf16.mxu0 %v542_v0  ;;  %448 = vmatprep.subr.bf16.mxu1 %v542_v0  ;;  %v503_v12 = vld [vmem:[#allocation2 + $0x60] sm:$0xff]   ;;  %v498_v13 = vld [vmem:[#allocation2 + $0x38] sm:$0xff]   ;;  %v504_v15 = vld [vmem:[#allocation2 + $0x68] sm:$0xff]  }
  0x17   :  { %v29_v14 = vld [vmem:[%s621_s0] sm:$0xff]  ;;  %v505_v17 = vld [vmem:[#allocation2 + $0x70] sm:$0xff]   ;;  %v507_v19 = vld [vmem:[#allocation2 + $0x80] sm:$0xff]  }
  0x18   :  { %v30_v16 = vpack.c.bf16 %v29_v14, %v29_v14  ;;  %v506_v18 = vld [vmem:[#allocation2 + $0x78] sm:$0xff]   ;;  %v508_v20 = vld [vmem:[#allocation2 + $0x88] sm:$0xff]   ;;  %v509_v21 = vld [vmem:[#allocation2 + $0x90] sm:$0xff]  }
  0x19   :  { %429 = vmatpush3.bf16.msra.mxu0 %v492_v2  ;;  %449 = vmatpush3.bf16.msra.mxu1 %v500_v6  ;;  %v510_v22 = vld [vmem:[#allocation2 + $0x98] sm:$0xff]   ;;  %v511_v23 = vld [vmem:[#allocation2 + $0xa0] sm:$0xff]   ;;  %v512_v24 = vld [vmem:[#allocation2 + $0xa8] sm:$0xff]  }
  0x1a   :  { %430 = vmatprep.subr.bf16.mxu0 %v542_v0  ;;  %450 = vmatprep.subr.bf16.mxu1 %v542_v0  ;;  %v372_v25 = vld [vmem:[%s623_s2] ss:$0 sm:$0xff]  ;;  %v513_v34 = vld [vmem:[#allocation2 + $0xb0] sm:$0xff]   ;;  %v381_v36 = vld [vmem:[%s623_s2 + $0x1] ss:$0 sm:$0xff] }
  0x1b   :  { %v514_v35 = vld [vmem:[#allocation2 + $0xb8] sm:$0xff]  }
  0x1c   :  { %v390_v45 = vld [vmem:[%s623_s2 + $0x2] ss:$0 sm:$0xff] }
  0x1d   :  { %431 = vmatpush3.bf16.msra.mxu0 %v493_v3  ;;  %451 = vmatpush3.bf16.msra.mxu1 %v501_v8 }
  0x1e   :  { %432 = vmatprep.subr.bf16.mxu0 %v542_v0  ;;  %452 = vmatprep.subr.bf16.mxu1 %v542_v0 }
  0x21   :  { %433 = vmatpush3.bf16.msra.mxu0 %v494_v5  ;;  %453 = vmatpush3.bf16.msra.mxu1 %v502_v10 }
  0x22   :  { %434 = vmatprep.subr.bf16.mxu0 %v542_v0  ;;  %454 = vmatprep.subr.bf16.mxu1 %v542_v0 }
  0x25   :  { %435 = vmatpush3.bf16.msra.mxu0 %v495_v7  ;;  %455 = vmatpush3.bf16.msra.mxu1 %v503_v12 }
  0x26   :  { %436 = vmatprep.subr.bf16.mxu0 %v542_v0  ;;  %456 = vmatprep.subr.bf16.mxu1 %v542_v0 }
  0x29   :  { %437 = vmatpush3.bf16.msra.mxu0 %v496_v9  ;;  %457 = vmatpush3.bf16.msra.mxu1 %v504_v15 }
  0x2a   :  { %438 = vmatprep.subr.bf16.mxu0 %v542_v0  ;;  %458 = vmatprep.subr.bf16.mxu1 %v542_v0 }
  0x2d   :  { %439 = vmatpush3.bf16.msra.mxu0 %v497_v11  ;;  %459 = vmatpush3.bf16.msra.mxu1 %v505_v17 }
  0x2e   :  { %440 = vmatprep.subr.bf16.mxu0 %v542_v0  ;;  %460 = vmatprep.subr.bf16.mxu1 %v542_v0 }
  0x31   :  { %441 = vmatpush3.bf16.msra.mxu0 %v498_v13  ;;  %461 = vmatpush3.bf16.msra.mxu1 %v506_v18 }
  0x32   :  { %466 = vmatprep.subr.bf16.mxu0 %v542_v0 }
  0x34   :  { %443 = vmatmul.mubr.bf16.vlgmr.msra.gmra.mrb[0].mxu0 %v30_v16 }
  0x35   :  { %482 = vmatprep.mubr.msk.bf16.mxu0 %vm543_vm0, %v542_v0  ;;  %467 = vmatpush3.bf16.msra.mxu0 %v507_v19 }
  0x36   :  { %468 = vmatprep.subr.bf16.mxu0 %v542_v0 }
  0x39   :  { %469 = vmatpush3.bf16.msra.mxu0 %v508_v20 }
  0x3a   :  { %470 = vmatprep.subr.bf16.mxu0 %v542_v0 }
  0x3d   :  { %471 = vmatpush3.bf16.msra.mxu0 %v509_v21 }
  0x3e   :  { %472 = vmatprep.subr.bf16.mxu0 %v542_v0 }
  0x41   :  { %473 = vmatpush3.bf16.msra.mxu0 %v510_v22 }
  0x42   :  { %474 = vmatprep.subr.bf16.mxu0 %v542_v0 }
  0x45   :  { %475 = vmatpush3.bf16.msra.mxu0 %v511_v23 }
  0x46   :  { %476 = vmatprep.subr.bf16.mxu0 %v542_v0 }
  0x49   :  { %477 = vmatpush3.bf16.msra.mxu0 %v512_v24 }
  0x4a   :  { %478 = vmatprep.subr.bf16.mxu0 %v542_v0 }
  0x4d   :  { %479 = vmatpush3.bf16.msra.mxu0 %v513_v34 }
  0x4e   :  { %480 = vmatprep.subr.bf16.mxu0 %v542_v0 }
  0x51   :  { %481 = vmatpush3.bf16.msra.mxu0 %v514_v35 }
 0x107   :  { %v168_v26 = vpop.f32.mrb[0].mxu0 }
 0x108   :  { %v169_v27 = vadd.f32 %v372_v25, %v168_v26  ;;  %v444_v28 = vpop.f32.mrb[1].mxu0 }
 0x109   :  { %v171_v29 = vpop.f32.mrb[2].mxu0 }
 0x10a   :  { %v174_v30 = vmul.f32 0.1, %v169_v27  ;;  %v445_v31 = vpop.f32.mrb[3].mxu0 }
 0x10c   :  { %v175_v32 = vmax.f32 %v169_v27, %v174_v30 }
 0x10e   :  { %v176_v33 = vpack.c.bf16 %v175_v32, %v175_v32 }
 0x110   :  { %463 = vmatmul.mubr.bf16.vlgmr.msra.gmra.mrb[0].mxu1 %v176_v33 }
 0x1e3   :  { %v263_v37 = vpop.f32.mrb[0].mxu1 }
 0x1e4   :  { %v264_v38 = vadd.f32 %v381_v36, %v263_v37  ;;  %v464_v39 = vpop.f32.mrb[1].mxu1 }
 0x1e5   :  { %v266_v40 = vpop.f32.mrb[2].mxu1 }
 0x1e6   :  { %v269_v41 = vmul.f32 0.1, %v264_v38  ;;  %v465_v42 = vpop.f32.mrb[3].mxu1 }
 0x1e8   :  { %v270_v43 = vmax.f32 %v264_v38, %v269_v41 }
 0x1ea   :  { %v271_v44 = vpack.c.bf16 %v270_v43, %v270_v43 }
 0x1ec   :  { %483 = vmatmul.mubr.bf16.vlgmr.msra.gmra.mrb[4].mxu0 %v271_v44 }
 0x2bf   :  { %v358_v46 = vpop.f32.mrb[4].mxu0 }
 0x2c0   :  { %v359_v47 = vadd.f32 %v390_v45, %v358_v46  ;;  %v484_v48 = vpop.f32.mrb[5].mxu0 }
 0x2c1   :  { %v361_v49 = vpop.f32.mrb[6].mxu0 }
 0x2c2   :  { %v364_v50 = vmax.f32 %v359_v47, 0.0  ;;  %v485_v51 = vpop.f32.mrb[7].mxu0 }
 0x2c4   :  { %v365_v52 = vmin.f32 %v364_v50, 6.0 }
 0x2c6   :  { %366 = vst [vmem:[%s624_s3] sm:$0xff] %v365_v52 }
 0x2c7   :  { %371 = vsyncpa [#allocation3], 1 }

</bundles_post_ra>
